<compile_context>
chip_gen: v7x
topology: tpu7x:2x2x1
jax: 0.10.0
libtpu: 0.0.40
codegen_flags: <defaults>
</compile_context>

<pallas_src>
import functools

import jax
import jax.numpy as jnp
from jax.experimental import pallas as pl
from jax.experimental.pallas import tpu as pltpu

_LANE = 128      # lane width: last-dim padding target
_SUBLANE = 16    # bf16 sublane packing: node-dim padding target


def _round_up(x, m):
    return (x + m - 1) // m * m


# ----------------------------- Pallas kernel -------------------------------

def _gcn_fused_kernel(s_ref, x_ref, w1_ref, b1_ref, w2_ref, b2_ref, o_ref,
                      *, prop_first_l1, prop_first_l2):
    """Fused 2-layer GCN:  o = S@(S@relu(S@(S@x)@W1 + b1))@W2 + b2 (reassociated)."""
    f32 = jnp.float32
    bf16 = jnp.bfloat16

    s = s_ref[...]          # [Np, Np] bf16 — loaded once, reused 4x on the MXU
    x = x_ref[...]          # [Np, Cin_p] bf16

    def propagate2(h_bf16):
        # S @ (S @ h), f32 accumulation on the MXU.
        t = jnp.dot(s, h_bf16, preferred_element_type=f32)
        return jnp.dot(s, t.astype(bf16), preferred_element_type=f32)

    # ---------------- layer 1 ----------------
    if prop_first_l1:      # C_in <= hidden: keep narrow features through S-matmuls
        h = propagate2(x)
        h = jnp.dot(h.astype(bf16), w1_ref[...], preferred_element_type=f32)
    else:                  # hidden < C_in: project down first
        h = jnp.dot(x, w1_ref[...], preferred_element_type=f32)
        h = propagate2(h.astype(bf16))
    h = jnp.maximum(h + b1_ref[...], 0.0)               # bias + ReLU, f32

    # ---------------- layer 2 ----------------
    if prop_first_l2:      # hidden <= C_out
        g = propagate2(h.astype(bf16))
        g = jnp.dot(g.astype(bf16), w2_ref[...], preferred_element_type=f32)
    else:                  # C_out < hidden: project down first (fewer MXU FLOPs)
        g = jnp.dot(h.astype(bf16), w2_ref[...], preferred_element_type=f32)
        g = propagate2(g.astype(bf16))
    o_ref[...] = (g + b2_ref[...]).astype(o_ref.dtype)


# ------------------------------ JAX glue ------------------------------------

def gcn_norm_dense(edge_index, edge_weight, num_nodes):
    """Dense D^-1/2 (A + I) D^-1/2, matching PyG gcn_norm (add_self_loops=True)."""
    row = edge_index[0]
    col = edge_index[1]
    loop = jnp.arange(num_nodes, dtype=row.dtype)
    row = jnp.concatenate([row, loop])
    col = jnp.concatenate([col, loop])
    w = jnp.concatenate([edge_weight, jnp.ones((num_nodes,), jnp.float32)])

    deg = jnp.zeros((num_nodes,), jnp.float32).at[col].add(w)
    deg_inv_sqrt = jnp.where(deg > 0, 1.0 / jnp.sqrt(deg), 0.0)
    norm = deg_inv_sqrt[row] * w * deg_inv_sqrt[col]

    # (S @ x)[col] += norm * x[row]  =>  S[col, row] = norm
    S = jnp.zeros((num_nodes, num_nodes), jnp.float32).at[col, row].add(norm)
    return S


def init_linear(key, c_in, c_out):
    """Deterministic Kaiming-uniform-like init for Linear(c_in, c_out)."""
    kw, kb = jax.random.split(key)
    bound = 1.0 / jnp.sqrt(jnp.float32(c_in))
    W = jax.random.uniform(kw, (c_in, c_out), jnp.float32, -bound, bound)
    b = jax.random.uniform(kb, (1, c_out), jnp.float32, -bound, bound)
    return W, b


def gcn_forward(params, x, edge_index, edge_weight=None):
    """GCN.forward (inference: dropout is identity). Single fused Pallas call."""
    W1, b1, W2, b2 = params
    n, c_in = x.shape
    hidden = W1.shape[1]
    c_out = W2.shape[1]

    if edge_weight is None:
        edge_weight = jnp.ones((edge_index.shape[1],), jnp.float32)
    S = gcn_norm_dense(edge_index, edge_weight, n)                    # f32, [N, N]

    # --- pad node dim to sublane multiple, feature dims to lane multiples ---
    n_p = _round_up(n, _SUBLANE)
    cin_p = _round_up(c_in, _LANE)
    h_p = _round_up(hidden, _LANE)
    cout_p = _round_up(c_out, _LANE)

    bf16 = jnp.bfloat16
    S_p = jnp.zeros((n_p, n_p), bf16).at[:n, :n].set(S.astype(bf16))
    x_p = jnp.zeros((n_p, cin_p), bf16).at[:n, :c_in].set(x.astype(bf16))
    W1_p = jnp.zeros((cin_p, h_p), bf16).at[:c_in, :hidden].set(W1.astype(bf16))
    b1_p = jnp.zeros((1, h_p), jnp.float32).at[:, :hidden].set(b1)
    W2_p = jnp.zeros((h_p, cout_p), bf16).at[:hidden, :c_out].set(W2.astype(bf16))
    b2_p = jnp.zeros((1, cout_p), jnp.float32).at[:, :c_out].set(b2)

    kern = functools.partial(
        _gcn_fused_kernel,
        prop_first_l1=(c_in <= hidden),
        prop_first_l2=(hidden <= c_out),
    )

    # Rough VMEM need (operands + f32 intermediates) with 4x headroom,
    # clamped to stay safe on v7x's 64 MiB physical VMEM.
    need = (2 * n_p * n_p + 2 * n_p * cin_p                  # S, x (bf16)
            + 2 * (cin_p * h_p + h_p * cout_p)               # W1, W2 (bf16)
            + 4 * (h_p + cout_p)                             # biases (f32)
            + 4 * n_p * (cin_p + h_p + 2 * cout_p))          # f32 intermediates / out
    vmem_limit = int(min(48 * 2**20, max(8 * 2**20, 4 * need)))

    out_p = pl.pallas_call(
        kern,
        out_shape=jax.ShapeDtypeStruct((n_p, cout_p), jnp.float32),
        in_specs=[
            pl.BlockSpec(memory_space=pltpu.VMEM),   # S   [Np, Np]
            pl.BlockSpec(memory_space=pltpu.VMEM),   # x   [Np, Cin_p]
            pl.BlockSpec(memory_space=pltpu.VMEM),   # W1  [Cin_p, H_p]
            pl.BlockSpec(memory_space=pltpu.VMEM),   # b1  [1, H_p]
            pl.BlockSpec(memory_space=pltpu.VMEM),   # W2  [H_p, Co_p]
            pl.BlockSpec(memory_space=pltpu.VMEM),   # b2  [1, Co_p]
        ],
        out_specs=pl.BlockSpec(memory_space=pltpu.VMEM),
        compiler_params=pltpu.CompilerParams(vmem_limit_bytes=vmem_limit),
    )(S_p, x_p, W1_p, b1_p, W2_p, b2_p)

    return out_p[:n, :c_out]


# ------------------------------- Driver --------------------------------------

if __name__ == "__main__":
    key = jax.random.PRNGKey(0)
    k_x, k_l1, k_l2 = jax.random.split(key, 3)

    # Small synthetic graph: N nodes on a bidirectional ring.
    num_nodes = 16
    in_channels = 8
    hidden_channels = 32
    out_channels = 4

    idx = jnp.arange(num_nodes, dtype=jnp.int32)
    nxt = (idx + 1) % num_nodes
    src = jnp.concatenate([idx, nxt])
    dst = jnp.concatenate([nxt, idx])
    edge_index = jnp.stack([src, dst], axis=0)                   # [2, num_edge]
    edge_weight = jnp.ones((edge_index.shape[1],), jnp.float32)  # module default ones

    x = jax.random.normal(k_x, (num_nodes, in_channels), jnp.float32)

    W1, b1 = init_linear(k_l1, in_channels, hidden_channels)
    W2, b2 = init_linear(k_l2, hidden_channels, out_channels)
    params = (W1, b1, W2, b2)

    out = gcn_forward(params, x, edge_index, edge_weight)
    jax.block_until_ready(out)

    assert out.shape == (num_nodes, out_channels)
    assert out.dtype == jnp.float32
    assert bool(jnp.all(jnp.isfinite(out)))
    print("KERNEL_OK")
</pallas_src>

<mosaic_0001>
module attributes {stable_mosaic.version = 11 : i64} {
  func.func @_gcn_fused_kernel(%arg0: memref<16x16xbf16, #tpu.memory_space<vmem>>, %arg1: memref<16x128xbf16, #tpu.memory_space<vmem>>, %arg2: memref<128x128xbf16, #tpu.memory_space<vmem>>, %arg3: memref<1x128xf32, #tpu.memory_space<vmem>>, %arg4: memref<128x128xbf16, #tpu.memory_space<vmem>>, %arg5: memref<1x128xf32, #tpu.memory_space<vmem>>, %arg6: memref<16x128xf32, #tpu.memory_space<vmem>>) attributes {dimension_semantics = [], scalar_prefetch = 0 : i64, scratch_operands = 0 : i64, tpu.core_type = #tpu.core_type<tc>} {
    %c0 = arith.constant 0 : index
    %c0_0 = arith.constant 0 : index
    %0 = vector.load %arg0[%c0, %c0_0] : memref<16x16xbf16, #tpu.memory_space<vmem>>, vector<16x16xbf16>
    %c0_1 = arith.constant 0 : index
    %c0_2 = arith.constant 0 : index
    %1 = vector.load %arg1[%c0_1, %c0_2] : memref<16x128xbf16, #tpu.memory_space<vmem>>, vector<16x128xbf16>
    %cst = arith.constant dense<0.000000e+00> : vector<16x128xf32>
    %2 = tpu.matmul %0, %1, %cst {dimension_numbers = #tpu.dot_dimension_numbers<[1], [0], [0], [1], [0, 0, 1, 1], [], []>} : vector<16x16xbf16>, vector<16x128xbf16>, vector<16x128xf32> -> vector<16x128xf32>
    %3 = arith.truncf %2 : vector<16x128xf32> to vector<16x128xbf16>
    %cst_3 = arith.constant dense<0.000000e+00> : vector<16x128xf32>
    %4 = tpu.matmul %0, %3, %cst_3 {dimension_numbers = #tpu.dot_dimension_numbers<[1], [0], [0], [1], [0, 0, 1, 1], [], []>} : vector<16x16xbf16>, vector<16x128xbf16>, vector<16x128xf32> -> vector<16x128xf32>
    %5 = arith.truncf %4 : vector<16x128xf32> to vector<16x128xbf16>
    %c0_4 = arith.constant 0 : index
    %c0_5 = arith.constant 0 : index
    %6 = vector.load %arg2[%c0_4, %c0_5] : memref<128x128xbf16, #tpu.memory_space<vmem>>, vector<128x128xbf16>
    %cst_6 = arith.constant dense<0.000000e+00> : vector<16x128xf32>
    %7 = tpu.matmul %5, %6, %cst_6 {dimension_numbers = #tpu.dot_dimension_numbers<[1], [0], [0], [1], [0, 0, 1, 1], [], []>} : vector<16x128xbf16>, vector<128x128xbf16>, vector<16x128xf32> -> vector<16x128xf32>
    %c0_7 = arith.constant 0 : index
    %c0_8 = arith.constant 0 : index
    %8 = vector.load %arg3[%c0_7, %c0_8] : memref<1x128xf32, #tpu.memory_space<vmem>>, vector<1x128xf32>
    %9 = vector.broadcast %8 : vector<1x128xf32> to vector<16x128xf32>
    %10 = arith.addf %7, %9 : vector<16x128xf32>
    %cst_9 = arith.constant 0.000000e+00 : f32
    %11 = vector.broadcast %cst_9 : f32 to vector<16x128xf32>
    %12 = arith.maximumf %10, %11 : vector<16x128xf32>
    %13 = arith.truncf %12 : vector<16x128xf32> to vector<16x128xbf16>
    %c0_10 = arith.constant 0 : index
    %c0_11 = arith.constant 0 : index
    %14 = vector.load %arg4[%c0_10, %c0_11] : memref<128x128xbf16, #tpu.memory_space<vmem>>, vector<128x128xbf16>
    %cst_12 = arith.constant dense<0.000000e+00> : vector<16x128xf32>
    %15 = tpu.matmul %13, %14, %cst_12 {dimension_numbers = #tpu.dot_dimension_numbers<[1], [0], [0], [1], [0, 0, 1, 1], [], []>} : vector<16x128xbf16>, vector<128x128xbf16>, vector<16x128xf32> -> vector<16x128xf32>
    %16 = arith.truncf %15 : vector<16x128xf32> to vector<16x128xbf16>
    %cst_13 = arith.constant dense<0.000000e+00> : vector<16x128xf32>
    %17 = tpu.matmul %0, %16, %cst_13 {dimension_numbers = #tpu.dot_dimension_numbers<[1], [0], [0], [1], [0, 0, 1, 1], [], []>} : vector<16x16xbf16>, vector<16x128xbf16>, vector<16x128xf32> -> vector<16x128xf32>
    %18 = arith.truncf %17 : vector<16x128xf32> to vector<16x128xbf16>
    %cst_14 = arith.constant dense<0.000000e+00> : vector<16x128xf32>
    %19 = tpu.matmul %0, %18, %cst_14 {dimension_numbers = #tpu.dot_dimension_numbers<[1], [0], [0], [1], [0, 0, 1, 1], [], []>} : vector<16x16xbf16>, vector<16x128xbf16>, vector<16x128xf32> -> vector<16x128xf32>
    %c0_15 = arith.constant 0 : index
    %c0_16 = arith.constant 0 : index
    %20 = vector.load %arg5[%c0_15, %c0_16] : memref<1x128xf32, #tpu.memory_space<vmem>>, vector<1x128xf32>
    %21 = vector.broadcast %20 : vector<1x128xf32> to vector<16x128xf32>
    %22 = arith.addf %19, %21 : vector<16x128xf32>
    %c0_17 = arith.constant 0 : index
    %c0_18 = arith.constant 0 : index
    %23 = vector.load %arg6[%c0_17, %c0_18] : memref<16x128xf32, #tpu.memory_space<vmem>>, vector<16x128xf32>
    tpu.vector_store %arg6[%c0_17, %c0_18], %22 {strides = array<i32>} : memref<16x128xf32, #tpu.memory_space<vmem>>, vector<16x128xf32>,
    return
  }
}

</mosaic_0001>

<bundles_post_ra>
// kernel: tpu_custom_call.1
= control target key start
LH: loop header
LB: loop body
LE: loop exit
PB: predicated region body
PF: predicated region fallthrough
CT: control target
= control target key end

     0   :  { %11 = vsyncpa [#allocation3], 0  ;;  %s956_s0 = inlined_call_operand.hbm [shape: bf16[16,16], index: 0, kind: input, shape index: {}]   ;;  %s957_s1 = inlined_call_operand.hbm [shape: bf16[16,128], index: 1, kind: input, shape index: {}]   ;;  %s958_s2 = inlined_call_operand.hbm [shape: bf16[128,128], index: 2, kind: input, shape index: {}]   ;;  %s959_s3 = inlined_call_operand.vmem [shape: f32[1,128], index: 3, kind: input, shape index: {}]   ;;  %s960_s4 = inlined_call_operand.hbm [shape: bf16[128,128], index: 4, kind: input, shape index: {}]   ;;  %s961_s5 = inlined_call_operand.vmem [shape: f32[1,128], index: 5, kind: input, shape index: {}]   ;;  %s962_s6 = inlined_call_operand.hbm [shape: f32[16,128], index: 6, kind: output, shape index: {}]  }
   0x1   :  { %12 = vsyncpa [#allocation6], 0 }
   0x2   :  { %13 = vsyncpa [#allocation9], 0 }
   0x3   :  { %14 = vsyncpa [#allocation4], 0  ;;  %s776_s21 = smov [#allocation5]   ;;  %s777_s23 = smov [#allocation2]  }
   0x4   :  { %s32_s22 = sshll.u32 %s776_s21, 4  ;;  %s20_s24 = sshll.u32 %s777_s23, 4  ;;  %s33_s22 = int_to_ptr.vmem [resolvable:$true] %s32_s22  ;;  %s822_s24 = int_to_ptr.vmem [resolvable:$true] %s20_s24 }
   0x5   :  { %s658_s27 = scalar_lea.hbm %s957_s1, 128 }
   0x6   :  { %p659_p0 = scmp.ne.s32.totalorder %s957_s1, %s658_s27  ;;  %p662_p1 = scmp.lt.u32.totalorder %s658_s27, %s957_s1 }
   0x8   :  { %p664_p2 = pnand %p662_p1, %p659_p0 }
   0xa   :  { %667 = shalt.err (!%p664_p2)
}
   0xb   :  { %s668_s8 = scalar_lea.vmem %s33_s22, 128  ;;  %p673_p4 = scmp.lt.s32.totalorder %s33_s22, %s33_s22 }
   0xc   :  { %p669_p3 = scmp.ne.s32.totalorder %s33_s22, %s668_s8  ;;  %p674_p5 = scmp.lt.s32.totalorder %s668_s8, %s668_s8 }
   0xe   :  { %p675_p6 = por %p674_p5, %p673_p4 }
  0x10   :  { %p676_p7 = pnand %p675_p6, %p669_p3 }
  0x12   :  { %679 = shalt.err (!%p676_p7)
}
  0x13   :  { %s778_s9 = smov 64   ;;  %s779_s10 = smov 4  }
  0x14   :  { %38 = dma.hbm_to_vmem [thread:$0]  %s957_s1, 128, %s33_s22, [#allocation6], %s778_s9, %s778_s9, %s779_s10  }
  0x15   :  { %s680_s15 = scalar_lea.hbm %s956_s0, 128 }
  0x16   :  { %p681_p8 = scmp.ne.s32.totalorder %s956_s0, %s680_s15  ;;  %p684_p9 = scmp.lt.u32.totalorder %s680_s15, %s956_s0 }
  0x18   :  { %p686_p10 = pnand %p684_p9, %p681_p8 }
  0x1a   :  { %689 = shalt.err (!%p686_p10)
}
  0x1b   :  { %s690_s20 = scalar_lea.vmem %s822_s24, 128  ;;  %p695_p12 = scmp.lt.s32.totalorder %s822_s24, %s822_s24 }
  0x1c   :  { %p691_p11 = scmp.ne.s32.totalorder %s822_s24, %s690_s20  ;;  %p696_p13 = scmp.lt.s32.totalorder %s690_s20, %s690_s20 }
  0x1e   :  { %p697_p0 = por %p696_p13, %p695_p12 }
  0x20   :  { %p698_p1 = pnand %p697_p0, %p691_p11 }
  0x22   :  { %701 = shalt.err (!%p698_p1)
}
  0x23   :  { %26 = dma.hbm_to_vmem [thread:$0]  %s956_s0, 128, %s822_s24, [#allocation3], %s778_s9, %s778_s9, %s779_s10  }
  0x24   :  { %s780_s22 = smov [#allocation7]   ;;  %s781_s25 = smov [#allocation8]  }
  0x25   :  { %s44_s23 = sshll.u32 %s780_s22, 4  ;;  %s58_s26 = sshll.u32 %s781_s25, 4  ;;  %s45_s23 = int_to_ptr.vmem [resolvable:$true] %s44_s23  ;;  %s859_s26 = int_to_ptr.vmem [resolvable:$true] %s58_s26 }
  0x26   :  { %s702_s29 = scalar_lea.hbm %s958_s2, 1024 }
  0x27   :  { %p703_p2 = scmp.ne.s32.totalorder %s958_s2, %s702_s29  ;;  %p706_p3 = scmp.lt.u32.totalorder %s702_s29, %s958_s2 }
  0x29   :  { %p708_p4 = pnand %p706_p3, %p703_p2 }
  0x2b   :  { %711 = shalt.err (!%p708_p4)
}
  0x2c   :  { %s712_s0 = scalar_lea.vmem %s45_s23, 1024  ;;  %p717_p6 = scmp.lt.s32.totalorder %s45_s23, %s45_s23 }
  0x2d   :  { %p713_p5 = scmp.ne.s32.totalorder %s45_s23, %s712_s0  ;;  %p718_p7 = scmp.lt.s32.totalorder %s712_s0, %s712_s0 }
  0x2f   :  { %p719_p8 = por %p718_p7, %p717_p6 }
  0x31   :  { %p720_p9 = pnand %p719_p8, %p713_p5 }
  0x33   :  { %723 = shalt.err (!%p720_p9)
}
  0x34   :  { %50 = dma.hbm_to_vmem [thread:$0]  %s958_s2, 1024, %s45_s23, [#allocation6], %s778_s9, %s778_s9, %s779_s10  }
  0x35   :  { %s724_s15 = scalar_lea.hbm %s960_s4, 1024 }
  0x36   :  { %p725_p10 = scmp.ne.s32.totalorder %s960_s4, %s724_s15  ;;  %p728_p11 = scmp.lt.u32.totalorder %s724_s15, %s960_s4 }
  0x38   :  { %p730_p12 = pnand %p728_p11, %p725_p10 }
  0x3a   :  { %733 = shalt.err (!%p730_p12)
}
  0x3b   :  { %s734_s20 = scalar_lea.vmem %s859_s26, 1024  ;;  %p739_p0 = scmp.lt.s32.totalorder %s859_s26, %s859_s26 }
  0x3c   :  { %p735_p13 = scmp.ne.s32.totalorder %s859_s26, %s734_s20  ;;  %p740_p1 = scmp.lt.s32.totalorder %s734_s20, %s734_s20 }
  0x3e   :  { %p741_p2 = por %p740_p1, %p739_p0 }
  0x40   :  { %p742_p3 = pnand %p741_p2, %p735_p13 }
  0x42   :  { %745 = shalt.err (!%p742_p3)
}
  0x43   :  { %64 = dma.hbm_to_vmem [thread:$0]  %s960_s4, 1024, %s859_s26, [#allocation9], %s778_s9, %s778_s9, %s779_s10  }
  0x44   :  { %768 = dma.done.wait [#allocation3], 128  }
  0x45   :  { %769 = vsyncadd [#allocation3], 4294967168 }
  0x46   :  { %770 = dma.done.wait [#allocation6], 1152  }
  0x47   :  { %771 = vsyncadd [#allocation6], 4294966144 }
  0x48   :  { %772 = dma.done.wait [#allocation9], 1024  }
  0x49   :  { %773 = vsyncadd [#allocation9], 4294966272  ;;  %v782_v0 = vmov 0.0   ;;  %vm783_vm0 = vmmov 0   ;;  %v640_v1 = vld [vmem:[#allocation5] sm:$0xff]   ;;  %v902_v2 = vld [vmem:[#allocation2] sm:$0xff]  }
  0x4a   :  { %565 = vmatprep.subr.bf16.mxu0 %v782_v0  ;;  %567 = vmatprep.mubr.msk.bf16.mxu0 %vm783_vm0, %v782_v0  ;;  %vm95_vm1 = vcmask 130048   ;;  %v642_v3 = vld [vmem:[#allocation7] sm:$0xff]   ;;  %v643_v4 = vld [vmem:[#allocation7 + $0x8] sm:$0xff]   ;;  %v644_v5 = vld [vmem:[#allocation7 + $0x10] sm:$0xff]   ;;  %s784_s21 = smov [#allocation10]  }
  0x4b   :  { %571 = vmatprep.subr.bf16.mxu1 %v782_v0  ;;  %573 = vmatprep.mubr.msk.bf16.mxu1 %vm783_vm0, %v782_v0  ;;  %v645_v6 = vld [vmem:[#allocation7 + $0x18] sm:$0xff]   ;;  %v646_v7 = vld [vmem:[#allocation7 + $0x20] sm:$0xff]   ;;  %v647_v8 = vld [vmem:[#allocation7 + $0x28] sm:$0xff]   ;;  %s501_s22 = sshll.u32 %s784_s21, 4  ;;  %s502_s22 = int_to_ptr.vmem [resolvable:$true] %s501_s22 }
  0x4c   :  { %566 = vmatpush3.bf16.msra.mxu0 %v640_v1  ;;  %v648_v9 = vld [vmem:[#allocation7 + $0x30] sm:$0xff]   ;;  %v649_v15 = vld [vmem:[#allocation7 + $0x38] sm:$0xff]   ;;  %v650_v16 = vld [vmem:[#allocation8] sm:$0xff]   ;;  %s746_s23 = scalar_lea.vmem %s502_s22, 256  ;;  %p751_p5 = scmp.lt.s32.totalorder %s502_s22, %s502_s22 }
  0x4d   :  { %577 = vmatprep.subr.bf16.mxu0 %v782_v0  ;;  %v651_v17 = vld [vmem:[#allocation8 + $0x8] sm:$0xff]   ;;  %v652_v18 = vld [vmem:[#allocation8 + $0x10] sm:$0xff]   ;;  %v653_v19 = vld [vmem:[#allocation8 + $0x18] sm:$0xff]   ;;  %p747_p4 = scmp.ne.s32.totalorder %s502_s22, %s746_s23  ;;  %p752_p6 = scmp.lt.s32.totalorder %s746_s23, %s746_s23 }
  0x4e   :  { %v654_v20 = vld [vmem:[#allocation8 + $0x20] sm:$0xff]   ;;  %v655_v21 = vld [vmem:[#allocation8 + $0x28] sm:$0xff]   ;;  %v656_v27 = vld [vmem:[#allocation8 + $0x30] sm:$0xff]  }
  0x4f   :  { %568 = vmatmul.mubr.msk.bf16.vlgmr.msra.gmra.mrb[0].mxu0 %vm95_vm1, %v902_v2  ;;  %v657_v28 = vld [vmem:[#allocation8 + $0x38] sm:$0xff]   ;;  %v519_v29 = vld [vmem:[%s959_s3] ss:$0 sm:$0xff]  ;;  %p753_p7 = por %p752_p6, %p751_p5 }
  0x50   :  { %593 = vmatprep.mubr.msk.bf16.mxu0 %vm783_vm0, %v782_v0  ;;  %578 = vmatpush3.bf16.msra.mxu0 %v642_v3  ;;  %v537_v49 = vld [vmem:[%s961_s5] ss:$0 sm:$0xff] }
  0x51   :  { %579 = vmatprep.subr.bf16.mxu0 %v782_v0  ;;  %p754_p8 = pnand %p753_p7, %p747_p4 }
  0x54   :  { %580 = vmatpush3.bf16.msra.mxu0 %v643_v4 }
  0x55   :  { %581 = vmatprep.subr.bf16.mxu0 %v782_v0 }
  0x58   :  { %582 = vmatpush3.bf16.msra.mxu0 %v644_v5 }
  0x59   :  { %583 = vmatprep.subr.bf16.mxu0 %v782_v0 }
  0x5c   :  { %584 = vmatpush3.bf16.msra.mxu0 %v645_v6 }
  0x5d   :  { %585 = vmatprep.subr.bf16.mxu0 %v782_v0 }
  0x60   :  { %586 = vmatpush3.bf16.msra.mxu0 %v646_v7 }
  0x61   :  { %587 = vmatprep.subr.bf16.mxu0 %v782_v0 }
  0x64   :  { %588 = vmatpush3.bf16.msra.mxu0 %v647_v8 }
  0x65   :  { %589 = vmatprep.subr.bf16.mxu0 %v782_v0 }
  0x68   :  { %590 = vmatpush3.bf16.msra.mxu0 %v648_v9 }
  0x69   :  { %591 = vmatprep.subr.bf16.mxu0 %v782_v0 }
  0x6c   :  { %592 = vmatpush3.bf16.msra.mxu0 %v649_v15 }
  0x6d   :  { %617 = vmatprep.subr.bf16.mxu0 %v782_v0 }
 0x122   :  { %v133_v10 = vpop.f32.mrb[0].mxu0 }
 0x123   :  { %v569_v11 = vpop.f32.mrb[1].mxu0 }
 0x124   :  { %v136_v12 = vpop.f32.mrb[2].mxu0 }
 0x125   :  { %v140_v13 = vpack.c.bf16 %v136_v12, %v133_v10  ;;  %v570_v14 = vpop.f32.mrb[3].mxu0 }
 0x127   :  { %572 = vmatpush3.bf16.msra.mxu1 %v140_v13 }
 0x128   :  { %597 = vmatprep.subr.bf16.mxu1 %v782_v0 }
 0x12a   :  { %574 = vmatmul.mubr.msk.bf16.vlgmr.msra.gmra.mrb[0].mxu1 %vm95_vm1, %v902_v2 }
 0x12b   :  { %613 = vmatprep.mubr.msk.bf16.mxu1 %vm783_vm0, %v782_v0  ;;  %598 = vmatpush3.bf16.msra.mxu1 %v650_v16 }
 0x12c   :  { %599 = vmatprep.subr.bf16.mxu1 %v782_v0 }
 0x12f   :  { %600 = vmatpush3.bf16.msra.mxu1 %v651_v17 }
 0x130   :  { %601 = vmatprep.subr.bf16.mxu1 %v782_v0 }
 0x133   :  { %602 = vmatpush3.bf16.msra.mxu1 %v652_v18 }
 0x134   :  { %603 = vmatprep.subr.bf16.mxu1 %v782_v0 }
 0x137   :  { %604 = vmatpush3.bf16.msra.mxu1 %v653_v19 }
 0x138   :  { %605 = vmatprep.subr.bf16.mxu1 %v782_v0 }
 0x13b   :  { %606 = vmatpush3.bf16.msra.mxu1 %v654_v20 }
 0x13c   :  { %607 = vmatprep.subr.bf16.mxu1 %v782_v0 }
 0x13f   :  { %608 = vmatpush3.bf16.msra.mxu1 %v655_v21 }
 0x140   :  { %609 = vmatprep.subr.bf16.mxu1 %v782_v0 }
 0x143   :  { %610 = vmatpush3.bf16.msra.mxu1 %v656_v27 }
 0x144   :  { %611 = vmatprep.subr.bf16.mxu1 %v782_v0 }
 0x147   :  { %612 = vmatpush3.bf16.msra.mxu1 %v657_v28 }
 0x148   :  { %623 = vmatprep.subr.bf16.mxu1 %v782_v0 }
 0x1fd   :  { %v175_v22 = vpop.f32.mrb[0].mxu1 }
 0x1fe   :  { %v575_v23 = vpop.f32.mrb[1].mxu1 }
 0x1ff   :  { %v178_v24 = vpop.f32.mrb[2].mxu1 }
 0x200   :  { %v182_v25 = vpack.c.bf16 %v178_v24, %v175_v22  ;;  %v576_v26 = vpop.f32.mrb[3].mxu1 }
 0x202   :  { %594 = vmatmul.mubr.bf16.vlgmr.msra.gmra.mrb[4].mxu0 %v182_v25 }
 0x203   :  { %619 = vmatprep.mubr.msk.bf16.mxu0 %vm783_vm0, %v782_v0 }
 0x2d5   :  { %v288_v30 = vpop.f32.mrb[4].mxu0 }
 0x2d6   :  { %v289_v31 = vadd.f32 %v519_v29, %v288_v30  ;;  %v595_v32 = vpop.f32.mrb[5].mxu0 }
 0x2d7   :  { %v291_v33 = vpop.f32.mrb[6].mxu0 }
 0x2d8   :  { %v292_v34 = vadd.f32 %v519_v29, %v291_v33  ;;  %v596_v35 = vpop.f32.mrb[7].mxu0  ;;  %v295_v36 = vmax.f32 %v289_v31, 0.0 }
 0x2da   :  { %v296_v37 = vmax.f32 %v292_v34, 0.0 }
 0x2dc   :  { %v297_v38 = vpack.c.bf16 %v296_v37, %v295_v36 }
 0x2de   :  { %614 = vmatmul.mubr.bf16.vlgmr.msra.gmra.mrb[4].mxu1 %v297_v38 }
 0x2df   :  { %625 = vmatprep.mubr.msk.bf16.mxu1 %vm783_vm0, %v782_v0 }
 0x3b1   :  { %v396_v39 = vpop.f32.mrb[4].mxu1 }
 0x3b2   :  { %v615_v40 = vpop.f32.mrb[5].mxu1 }
 0x3b3   :  { %v399_v41 = vpop.f32.mrb[6].mxu1 }
 0x3b4   :  { %v403_v42 = vpack.c.bf16 %v399_v41, %v396_v39  ;;  %v616_v43 = vpop.f32.mrb[7].mxu1 }
 0x3b6   :  { %618 = vmatpush3.bf16.msra.mxu0 %v403_v42 }
 0x3b9   :  { %620 = vmatmul.mubr.msk.bf16.vlgmr.msra.gmra.mrb[8].mxu0 %vm95_vm1, %v902_v2 }
 0x48c   :  { %v438_v44 = vpop.f32.mrb[8].mxu0 }
 0x48d   :  { %v621_v45 = vpop.f32.mrb[9].mxu0 }
 0x48e   :  { %v441_v46 = vpop.f32.mrb[10].mxu0 }
 0x48f   :  { %v445_v47 = vpack.c.bf16 %v441_v46, %v438_v44  ;;  %v622_v48 = vpop.f32.mrb[11].mxu0 }
 0x491   :  { %624 = vmatpush3.bf16.msra.mxu1 %v445_v47 }
 0x494   :  { %626 = vmatmul.mubr.msk.bf16.vlgmr.msra.gmra.mrb[8].mxu1 %vm95_vm1, %v902_v2 }
 0x567   :  { %v487_v50 = vpop.f32.mrb[8].mxu1 }
 0x568   :  { %v488_v51 = vadd.f32 %v537_v49, %v487_v50  ;;  %v627_v52 = vpop.f32.mrb[9].mxu1 }
 0x569   :  { %v490_v53 = vpop.f32.mrb[10].mxu1 }
 0x56a   :  { %494 = vst [vmem:[#allocation10] sm:$0xff] %v488_v51  ;;  %v491_v54 = vadd.f32 %v537_v49, %v490_v53  ;;  %v628_v55 = vpop.f32.mrb[11].mxu1 }
 0x56c   :  { %495 = vst [vmem:[#allocation10 + $0x8] sm:$0xff] %v491_v54 }
 0x56d   :  { %757 = shalt.err (!%p754_p8)
}
 0x56e   :  { %s758_s26 = scalar_lea.hbm %s962_s6, 256 }
 0x56f   :  { %p759_p9 = scmp.ne.s32.totalorder %s962_s6, %s758_s26  ;;  %p762_p10 = scmp.lt.u32.totalorder %s758_s26, %s962_s6 }
 0x571   :  { %p764_p11 = pnand %p762_p10, %p759_p9 }
 0x573   :  { %767 = shalt.err (!%p764_p11)
}
 0x574   :  { %s785_s7 = smov 128   ;;  %s786_s8 = smov 8  }
 0x575   :  { %507 = dma.vmem_to_hbm [thread:$0]  %s502_s22, 256, %s962_s6, [#allocation4], %s785_s7, %s785_s7, %s786_s8  }
 0x576   :  { %774 = dma.done.wait [#allocation4], 256  }
 0x577   :  { %775 = vsyncadd [#allocation4], 4294967040 }
 0x578   :  { %511 = vsyncpa [#allocation3], 1 }
 0x579   :  { %512 = vsyncpa [#allocation6], 1 }
 0x57a   :  { %513 = vsyncpa [#allocation9], 1 }
 0x57b   :  { %514 = vsyncpa [#allocation4], 1 }

</bundles_post_ra>
